<compile_context>
chip_gen: v7x
topology: tpu7x:2x2x1
jax: 0.10.0
libtpu: 0.0.40
codegen_flags: <defaults>
</compile_context>

<pallas_src>
import functools

import jax
import jax.numpy as jnp
from jax.experimental import pallas as pl
from jax.experimental.pallas import tpu as pltpu


def _round_up(x: int, m: int) -> int:
    return -(-x // m) * m


def decoder_kernel(
    emb_ref, enc_ref, hc0_ref,
    wq_ref, wkv_ref, wo_ref, wlstm_ref, wfc_ref,
    pool_ref, expand_ref, bias_ref, bfc_ref,
    pred_ref, hc_ref,
    h_sc,
    *, num_heads: int, head_dim: int, embed_dim: int, hidden_dim: int,
    hc_width: int,
):
    f32 = jnp.float32
    bf16 = jnp.bfloat16
    E, H, NH = embed_dim, hidden_dim, num_heads
    scale = jnp.float32(head_dim) ** -0.5
    v_idx = pl.program_id(1)

    # Heavy state (attention + 1-step LSTM) computed once per batch block, on
    # the first vocab tile; h_new stashed (bf16) in scratch for the fc tiles.
    @pl.when(v_idx == 0)
    def _attention_and_lstm():
        emb = emb_ref[...]                     # (TB, E)    bf16
        enc = enc_ref[...]                     # (TB, S, E) bf16
        hc0 = hc0_ref[...]                     # (TB, 2H)   f32
        h0 = hc0[:, :H]
        c0 = hc0[:, H:]
        TB, S, _ = enc.shape

        # packed biases (f32), one per row of an (8, wb) slab
        b_q = bias_ref[0:1, 0:E]
        b_kv = bias_ref[1:2, 0:2 * E]
        b_o = bias_ref[2:3, 0:E]
        b_l = bias_ref[3:4, 0:4 * H]

        # --- attention projections: bf16 MXU operands, f32 accumulation ---
        q = jnp.dot(emb, wq_ref[...], preferred_element_type=f32) + b_q        # (TB, E)
        enc2 = enc.reshape(TB * S, E)
        kv = jnp.dot(enc2, wkv_ref[...], preferred_element_type=f32) + b_kv    # (TB*S, 2E)
        k = kv[:, :E].reshape(TB, S, E)
        v = kv[:, E:].reshape(TB, S, E)

        # --- all heads at once (query length T=1) ---
        # scores[b,s,h] = sum_{d in head h} q[b,d]*k[b,s,d] via 0/1 bf16 matmul
        prod = (q * scale)[:, None, :] * k                                      # (TB, S, E) f32 VPU
        scores = jnp.dot(prod.reshape(TB * S, E).astype(bf16), pool_ref[...],
                         preferred_element_type=f32).reshape(TB, S, NH)

        m = jnp.max(scores, axis=1, keepdims=True)                              # (TB, 1, NH)
        p = jnp.exp(scores - m)
        denom = jnp.sum(p, axis=1, keepdims=True)
        w = p * pl.reciprocal(denom, approx=True)                               # (TB, S, NH)

        # broadcast each head weight over its head_dim lanes, contract over S
        w_full = jnp.dot(w.reshape(TB * S, NH).astype(bf16), expand_ref[...],
                         preferred_element_type=f32).reshape(TB, S, E)
        ctx = jnp.sum(w_full * v, axis=1)                                       # (TB, E)
        context = jnp.dot(ctx.astype(bf16), wo_ref[...],
                          preferred_element_type=f32) + b_o                     # (TB, E)

        # --- single LSTM step: one fused matmul over [emb | context | h0] ---
        x_cat = jnp.concatenate(
            [emb, context.astype(bf16), h0.astype(bf16)], axis=-1)              # (TB, 2E+H) bf16
        gates = jnp.dot(x_cat, wlstm_ref[...],
                        preferred_element_type=f32) + b_l                       # (TB, 4H) f32
        i_g = jax.nn.sigmoid(gates[:, 0 * H:1 * H])
        f_g = jax.nn.sigmoid(gates[:, 1 * H:2 * H])
        g_g = jnp.tanh(gates[:, 2 * H:3 * H])
        o_g = jax.nn.sigmoid(gates[:, 3 * H:4 * H])
        c_new = f_g * c0 + i_g * g_g
        h_new = o_g * jnp.tanh(c_new)

        h_sc[...] = h_new.astype(bf16)

        # lane-padded (h|c) pack -> unmasked full-width store
        if hc_width == 2 * H:
            hc_out = jnp.concatenate([h_new, c_new], axis=-1)
        else:
            pad = jnp.zeros((h_new.shape[0], hc_width - 2 * H), f32)
            hc_out = jnp.concatenate([h_new, c_new, pad], axis=-1)
        hc_ref[...] = hc_out

    # --- vocab projection for this (batch block, vocab tile) ---
    pred_ref[...] = jnp.dot(h_sc[...], wfc_ref[...],
                            preferred_element_type=f32) + bfc_ref[...]


def prepare_params(params, *, num_heads, vocab_block=2048):
    """One-time weight prep: transpose to (in,out), cast to bf16, fuse K|V,
    pack biases, pad vocab lanes, build bf16 pool/expand head matrices."""
    E = params["w_q"].shape[0]
    H = params["w_hh"].shape[1]
    V = params["w_fc"].shape[0]
    assert H == E, ("Decoder requires hidden_dim == embed_dim "
                    "(LSTM input = embed+hidden but cat(emb, context) = 2*embed)")
    assert E % num_heads == 0
    head_dim = E // num_heads

    to_bf = lambda w: jnp.asarray(w, jnp.float32).T.astype(jnp.bfloat16)  # (out,in)->(in,out)

    # fused K|V projection weight: (E, 2E)
    w_kv = jnp.concatenate([to_bf(params["w_k"]), to_bf(params["w_v"])], axis=1)
    # fused LSTM weight: rows [emb | context | h0] -> (E + 2H, 4H)
    w_lstm = to_bf(jnp.concatenate([params["w_ih"], params["w_hh"]], axis=1))

    # vocab padded to a multiple of the vocab tile (>=128) -> lane-dense fc tiles
    TV = min(_round_up(vocab_block, 128), _round_up(V, 128))
    Vp = _round_up(V, TV)
    w_fc = jnp.zeros((H, Vp), jnp.bfloat16).at[:, :V].set(to_bf(params["w_fc"]))
    b_fc = jnp.zeros((1, Vp), jnp.float32).at[0, :V].set(
        jnp.asarray(params["b_fc"], jnp.float32))

    # 0/1 per-head pool (E, NH) / expand (NH, E) matrices -- exact in bf16
    head_of = jnp.arange(E) // head_dim
    pool = (head_of[:, None] == jnp.arange(num_heads)[None, :]).astype(jnp.bfloat16)
    expand = pool.T

    wb = _round_up(max(2 * E, 4 * H), 128)
    bias = jnp.zeros((8, wb), jnp.float32)
    bias = bias.at[0, :E].set(params["b_q"])
    bias = bias.at[1, :E].set(params["b_k"])
    bias = bias.at[1, E:2 * E].set(params["b_v"])
    bias = bias.at[2, :E].set(params["b_o"])
    bias = bias.at[3, :4 * H].set(params["b_ih"] + params["b_hh"])

    return {
        # bf16 table: emb is only ever consumed by bf16 MXU matmuls
        "embedding": jnp.asarray(params["embedding"], jnp.float32).astype(jnp.bfloat16),
        "w_q": to_bf(params["w_q"]),
        "w_kv": w_kv,                     # (E, 2E) bf16
        "w_o": to_bf(params["w_o"]),
        "w_lstm": w_lstm,                 # (E+2H, 4H) bf16
        "w_fc": w_fc,                     # (H, Vp) bf16, vocab lane-padded
        "b_fc": b_fc,                     # (1, Vp) f32
        "pool": pool,                     # (E, NH) bf16
        "expand": expand,                 # (NH, E) bf16
        "bias": bias,                     # (8, wb) f32
    }


@functools.partial(jax.jit,
                   static_argnames=("num_heads", "vocab_size",
                                    "block_batch", "block_vocab"))
def decoder_forward(prepped, target_token, encoder_outputs, dec_h, dec_c,
                    *, num_heads, vocab_size, block_batch=128, block_vocab=2048):
    """Pallas-backed Decoder.forward. Returns (predictions, hidden, cell)."""
    B, T = target_token.shape
    assert T == 1, "single decode step"
    _, S, E = encoder_outputs.shape
    H = dec_h.shape[-1]
    Vp = prepped["w_fc"].shape[-1]
    head_dim = E // num_heads

    # vocab tiling (must match vocab_block used in prepare_params)
    TV = min(_round_up(block_vocab, 128), Vp)
    assert Vp % TV == 0, "block_vocab must match vocab_block used in prepare_params"
    nv = Vp // TV

    # batch tiling: TB rows per grid step; >=2 blocks when B>=16 so v7x's two
    # TensorCores both get work on the 'parallel' axis.
    TB = min(block_batch, B)
    if TB < B:
        TB = _round_up(TB, 8)
    if B >= 16:
        TB = min(TB, max(8, _round_up(-(-B // 2), 8)))
    nb = -(-B // TB)
    Bp = nb * TB

    HCW = _round_up(2 * H, 128)   # lane-padded (h|c) output width

    # glue kept in JAX: embedding gather (bf16 table) + packing (h, c).
    # TODO(synk): move the gather in-kernel via PrefetchScalarGridSpec on
    # target_token, and (for autoregressive decode loops) hoist the K/V
    # projection out of the per-step kernel by caching k,v across steps.
    emb = prepped["embedding"][target_token[:, 0]]                 # (B, E)  bf16
    enc = encoder_outputs.astype(jnp.bfloat16)                     # (B, S, E) bf16
    hc0 = jnp.concatenate([dec_h[0], dec_c[0]], axis=-1)           # (B, 2H) f32
    hc0 = hc0.astype(jnp.float32)

    if Bp != B:
        pad = Bp - B
        emb = jnp.pad(emb, ((0, pad), (0, 0)))
        enc = jnp.pad(enc, ((0, pad), (0, 0), (0, 0)))
        hc0 = jnp.pad(hc0, ((0, pad), (0, 0)))

    kernel = functools.partial(
        decoder_kernel, num_heads=num_heads, head_dim=head_dim,
        embed_dim=E, hidden_dim=H, hc_width=HCW)

    # weights/biases: whole-array VMEM residents (not pipelined / not 2x buffered)
    wspec = pl.BlockSpec(memory_space=pltpu.MemorySpace.VMEM)

    # explicit VMEM budget (v5e scoped default is 16 MiB; v7x has 64 MiB physical)
    wb = prepped["bias"].shape[-1]
    est = (2 * TB * S * E * 2            # enc tile, double buffered, bf16
           + 2 * TB * E * 2              # emb tile
           + 2 * TB * 2 * H * 4          # hc0 tile
           + 2 * TB * TV * 4             # pred tile (out)
           + 2 * TB * HCW * 4            # hc tile (out)
           + 2 * (H * TV * 2 + TV * 4)   # w_fc / b_fc tiles
           + (E * E + 2 * E * E + E * E + (E + 2 * H) * 4 * H) * 2   # resident weights
           + 2 * E * num_heads * 2 + 8 * wb * 4                      # pool/expand/bias
           + TB * H * 2                  # h scratch
           + 6 * TB * S * E * 4)         # in-kernel f32 temporaries (kv/k/v/prod/w_full)
    vmem_limit = min(max(int(est * 1.25) + (2 << 20), 32 << 20), 64 << 20)

    pred, hc = pl.pallas_call(
        kernel,
        out_shape=(
            jax.ShapeDtypeStruct((Bp, Vp), jnp.float32),
            jax.ShapeDtypeStruct((Bp, HCW), jnp.float32),
        ),
        grid_spec=pltpu.PrefetchScalarGridSpec(
            num_scalar_prefetch=0,
            grid=(nb, nv),
            in_specs=[pl.BlockSpec((TB, E), lambda b, v: (b, 0)),         # embedded (bf16)
                      pl.BlockSpec((TB, S, E), lambda b, v: (b, 0, 0)),   # encoder outputs (bf16)
                      pl.BlockSpec((TB, 2 * H), lambda b, v: (b, 0)),     # [h0 | c0] (f32)
                      wspec,                                              # w_q
                      wspec,                                              # w_kv
                      wspec,                                              # w_o
                      wspec,                                              # w_lstm
                      pl.BlockSpec((H, TV), lambda b, v: (0, v)),         # w_fc tile
                      wspec,                                              # pool
                      wspec,                                              # expand
                      wspec,                                              # bias slab
                      pl.BlockSpec((1, TV), lambda b, v: (0, v))],        # b_fc tile
            out_specs=[pl.BlockSpec((TB, TV), lambda b, v: (b, v)),
                       pl.BlockSpec((TB, HCW), lambda b, v: (b, 0))],
            scratch_shapes=[pltpu.VMEM((TB, H), jnp.bfloat16)],
        ),
        compiler_params=pltpu.CompilerParams(
            dimension_semantics=("parallel", "arbitrary"),
            vmem_limit_bytes=vmem_limit),
    )(emb, enc, hc0,
      prepped["w_q"], prepped["w_kv"], prepped["w_o"], prepped["w_lstm"],
      prepped["w_fc"], prepped["pool"], prepped["expand"], prepped["bias"],
      prepped["b_fc"])

    pred = pred[:B, :vocab_size]
    h_new = hc[:B, :H]
    c_new = hc[:B, H:2 * H]
    return pred, h_new[None], c_new[None]    # hidden/cell back to (1, B, H)


# ----------------------------- pure-JAX reference ----------------------------

def decoder_reference(params, target_token, encoder_outputs, dec_h, dec_c,
                      *, num_heads):
    B, T = target_token.shape
    _, S, E = encoder_outputs.shape
    H = dec_h.shape[-1]
    dh = E // num_heads
    scale = dh ** -0.5

    emb = params["embedding"][target_token]                              # (B, 1, E)
    lin = lambda x, w, b: x @ w.T + b
    q = lin(emb, params["w_q"], params["b_q"]).reshape(B, T, num_heads, dh).transpose(0, 2, 1, 3)
    k = lin(encoder_outputs, params["w_k"], params["b_k"]).reshape(B, S, num_heads, dh).transpose(0, 2, 1, 3)
    v = lin(encoder_outputs, params["w_v"], params["b_v"]).reshape(B, S, num_heads, dh).transpose(0, 2, 1, 3)
    s = jnp.einsum("bhqd,bhkd->bhqk", q, k) * scale
    w = jax.nn.softmax(s, axis=-1)
    ctx = jnp.einsum("bhqk,bhkd->bhqd", w, v).transpose(0, 2, 1, 3).reshape(B, T, E)
    context = lin(ctx, params["w_o"], params["b_o"])

    x = jnp.concatenate([emb, context], axis=2)[:, 0]                    # (B, E+H)
    h0, c0 = dec_h[0], dec_c[0]
    gates = x @ params["w_ih"].T + params["b_ih"] + h0 @ params["w_hh"].T + params["b_hh"]
    i_g = jax.nn.sigmoid(gates[:, 0 * H:1 * H])
    f_g = jax.nn.sigmoid(gates[:, 1 * H:2 * H])
    g_g = jnp.tanh(gates[:, 2 * H:3 * H])
    o_g = jax.nn.sigmoid(gates[:, 3 * H:4 * H])
    c_new = f_g * c0 + i_g * g_g
    h_new = o_g * jnp.tanh(c_new)
    pred = h_new @ params["w_fc"].T + params["b_fc"]
    return pred, h_new[None], c_new[None]


# ----------------------------------- main ------------------------------------

if __name__ == "__main__":
    B, S = 2, 8
    embed_dim = 32
    hidden_dim = 32          # must equal embed_dim for the reference module to type-check
    num_heads = 4
    vocab_size = 64

    key = jax.random.PRNGKey(0)
    ks = jax.random.split(key, 20)
    n = lambda k, shp, s=0.02: (s * jax.random.normal(k, shp)).astype(jnp.float32)

    params = {
        "embedding": n(ks[0], (vocab_size, embed_dim), 0.1),
        "w_q": n(ks[1], (embed_dim, embed_dim)), "b_q": n(ks[2], (embed_dim,)),
        "w_k": n(ks[3], (embed_dim, embed_dim)), "b_k": n(ks[4], (embed_dim,)),
        "w_v": n(ks[5], (embed_dim, embed_dim)), "b_v": n(ks[6], (embed_dim,)),
        "w_o": n(ks[7], (embed_dim, embed_dim)), "b_o": n(ks[8], (embed_dim,)),
        "w_ih": n(ks[9], (4 * hidden_dim, embed_dim + hidden_dim)),
        "w_hh": n(ks[10], (4 * hidden_dim, hidden_dim)),
        "b_ih": n(ks[11], (4 * hidden_dim,)),
        "b_hh": n(ks[12], (4 * hidden_dim,)),
        "w_fc": n(ks[13], (vocab_size, hidden_dim)),
        "b_fc": n(ks[14], (vocab_size,)),
    }

    target_token = jax.random.randint(ks[15], (B, 1), 0, vocab_size, dtype=jnp.int32)
    encoder_outputs = n(ks[16], (B, S, embed_dim), 1.0)
    dec_h = n(ks[17], (1, B, hidden_dim), 1.0)
    dec_c = n(ks[18], (1, B, hidden_dim), 1.0)

    prepped = prepare_params(params, num_heads=num_heads)
    pred, h_new, c_new = decoder_forward(
        prepped, target_token, encoder_outputs, dec_h, dec_c,
        num_heads=num_heads, vocab_size=vocab_size)
    jax.block_until_ready((pred, h_new, c_new))

    pred_r, h_r, c_r = decoder_reference(
        params, target_token, encoder_outputs, dec_h, dec_c, num_heads=num_heads)

    assert pred.shape == (B, vocab_size)
    assert h_new.shape == (1, B, hidden_dim) and c_new.shape == (1, B, hidden_dim)
    # bf16 MXU operands / bf16-streamed inputs + approx reciprocal -> loose tol
    assert jnp.allclose(pred, pred_r, atol=1e-2, rtol=1e-2)
    assert jnp.allclose(h_new, h_r, atol=1e-2, rtol=1e-2)
    assert jnp.allclose(c_new, c_r, atol=1e-2, rtol=1e-2)

    print("KERNEL_OK")
</pallas_src>

<mosaic_0001>
module attributes {stable_mosaic.version = 11 : i64} {
  func.func @decoder_kernel(%arg0: i32, %arg1: i32, %arg2: memref<2x32xbf16, #tpu.memory_space<vmem>>, %arg3: memref<2x8x32xbf16, #tpu.memory_space<vmem>>, %arg4: memref<2x64xf32, #tpu.memory_space<vmem>>, %arg5: memref<32x32xbf16, #tpu.memory_space<vmem>>, %arg6: memref<32x64xbf16, #tpu.memory_space<vmem>>, %arg7: memref<32x32xbf16, #tpu.memory_space<vmem>>, %arg8: memref<96x128xbf16, #tpu.memory_space<vmem>>, %arg9: memref<32x128xbf16, #tpu.memory_space<vmem>>, %arg10: memref<32x4xbf16, #tpu.memory_space<vmem>>, %arg11: memref<4x32xbf16, #tpu.memory_space<vmem>>, %arg12: memref<8x128xf32, #tpu.memory_space<vmem>>, %arg13: memref<1x128xf32, #tpu.memory_space<vmem>>, %arg14: memref<2x128xf32, #tpu.memory_space<vmem>>, %arg15: memref<2x128xf32, #tpu.memory_space<vmem>>, %arg16: memref<2x32xbf16, #tpu.memory_space<vmem>>) attributes {dimension_semantics = [#tpu.dimension_semantics<parallel>, #tpu.dimension_semantics<arbitrary>], iteration_bounds = array<i64: 1, 1>, scalar_prefetch = 0 : i64, scratch_operands = 1 : i64, tpu.core_type = #tpu.core_type<tc>, window_params = [{transform_indices = @transform_0, window_bounds = array<i64: 2, 32>}, {transform_indices = @transform_1, window_bounds = array<i64: 2, 8, 32>}, {transform_indices = @transform_2, window_bounds = array<i64: 2, 64>}, {pipeline_mode = #tpu.pipeline_mode<synchronous>, transform_indices = @transform_3, window_bounds = array<i64: 32, 32>}, {pipeline_mode = #tpu.pipeline_mode<synchronous>, transform_indices = @transform_4, window_bounds = array<i64: 32, 64>}, {pipeline_mode = #tpu.pipeline_mode<synchronous>, transform_indices = @transform_5, window_bounds = array<i64: 32, 32>}, {pipeline_mode = #tpu.pipeline_mode<synchronous>, transform_indices = @transform_6, window_bounds = array<i64: 96, 128>}, {transform_indices = @transform_7, window_bounds = array<i64: 32, 128>}, {pipeline_mode = #tpu.pipeline_mode<synchronous>, transform_indices = @transform_8, window_bounds = array<i64: 32, 4>}, {pipeline_mode = #tpu.pipeline_mode<synchronous>, transform_indices = @transform_9, window_bounds = array<i64: 4, 32>}, {pipeline_mode = #tpu.pipeline_mode<synchronous>, transform_indices = @transform_10, window_bounds = array<i64: 8, 128>}, {transform_indices = @transform_11, window_bounds = array<i64: 1, 128>}, {transform_indices = @transform_12, window_bounds = array<i64: 2, 128>}, {transform_indices = @transform_13, window_bounds = array<i64: 2, 128>}]} {
    %cst = arith.constant 8.000000e+00 : f32
    %cst_0 = arith.constant -5.000000e-01 : f32
    %0 = math.powf %cst, %cst_0 : f32
    %c0_i32 = arith.constant 0 : i32
    %1 = arith.cmpi eq, %arg1, %c0_i32 : i32
    %2 = arith.extui %1 : i1 to i32
    %c0_i32_1 = arith.constant 0 : i32
    %3 = arith.cmpi ne, %2, %c0_i32_1 : i32
    scf.if %3 {
      %c0_10 = arith.constant 0 : index
      %c0_11 = arith.constant 0 : index
      %11 = vector.load %arg2[%c0_10, %c0_11] : memref<2x32xbf16, #tpu.memory_space<vmem>>, vector<2x32xbf16>
      %c0_12 = arith.constant 0 : index
      %c0_13 = arith.constant 0 : index
      %c0_14 = arith.constant 0 : index
      %12 = vector.load %arg3[%c0_12, %c0_13, %c0_14] : memref<2x8x32xbf16, #tpu.memory_space<vmem>>, vector<2x8x32xbf16>
      %c0_15 = arith.constant 0 : index
      %c0_16 = arith.constant 0 : index
      %13 = vector.load %arg4[%c0_15, %c0_16] : memref<2x64xf32, #tpu.memory_space<vmem>>, vector<2x64xf32>
      %14 = vector.extract_strided_slice %13 {offsets = [0, 0], sizes = [2, 32], strides = [1, 1]} : vector<2x64xf32> to vector<2x32xf32>
      %15 = vector.extract_strided_slice %13 {offsets = [0, 32], sizes = [2, 32], strides = [1, 1]} : vector<2x64xf32> to vector<2x32xf32>
      %c0_17 = arith.constant 0 : index
      %c0_18 = arith.constant 0 : index
      %16 = vector.load %arg12[%c0_17, %c0_18] : memref<8x128xf32, #tpu.memory_space<vmem>>, vector<1x32xf32>
      %c1 = arith.constant 1 : index
      %c0_19 = arith.constant 0 : index
      %17 = vector.load %arg12[%c1, %c0_19] : memref<8x128xf32, #tpu.memory_space<vmem>>, vector<1x64xf32>
      %c2 = arith.constant 2 : index
      %c0_20 = arith.constant 0 : index
      %18 = vector.load %arg12[%c2, %c0_20] : memref<8x128xf32, #tpu.memory_space<vmem>>, vector<1x32xf32>
      %c3 = arith.constant 3 : index
      %c0_21 = arith.constant 0 : index
      %19 = vector.load %arg12[%c3, %c0_21] : memref<8x128xf32, #tpu.memory_space<vmem>>, vector<1x128xf32>
      %c0_22 = arith.constant 0 : index
      %c0_23 = arith.constant 0 : index
      %20 = vector.load %arg5[%c0_22, %c0_23] : memref<32x32xbf16, #tpu.memory_space<vmem>>, vector<32x32xbf16>
      %cst_24 = arith.constant dense<0.000000e+00> : vector<2x32xf32>
      %21 = tpu.matmul %11, %20, %cst_24 {dimension_numbers = #tpu.dot_dimension_numbers<[1], [0], [0], [1], [0, 0, 1, 1], [], []>} : vector<2x32xbf16>, vector<32x32xbf16>, vector<2x32xf32> -> vector<2x32xf32>
      %22 = vector.broadcast %16 : vector<1x32xf32> to vector<2x32xf32>
      %23 = arith.addf %21, %22 : vector<2x32xf32>
      %24 = vector.shape_cast %12 : vector<2x8x32xbf16> to vector<16x32xbf16>
      %c0_25 = arith.constant 0 : index
      %c0_26 = arith.constant 0 : index
      %25 = vector.load %arg6[%c0_25, %c0_26] : memref<32x64xbf16, #tpu.memory_space<vmem>>, vector<32x64xbf16>
      %cst_27 = arith.constant dense<0.000000e+00> : vector<16x64xf32>
      %26 = tpu.matmul %24, %25, %cst_27 {dimension_numbers = #tpu.dot_dimension_numbers<[1], [0], [0], [1], [0, 0, 1, 1], [], []>} : vector<16x32xbf16>, vector<32x64xbf16>, vector<16x64xf32> -> vector<16x64xf32>
      %27 = vector.broadcast %17 : vector<1x64xf32> to vector<16x64xf32>
      %28 = arith.addf %26, %27 : vector<16x64xf32>
      %29 = vector.extract_strided_slice %28 {offsets = [0, 0], sizes = [16, 32], strides = [1, 1]} : vector<16x64xf32> to vector<16x32xf32>
      %30 = vector.shape_cast %29 : vector<16x32xf32> to vector<2x8x32xf32>
      %31 = vector.extract_strided_slice %28 {offsets = [0, 32], sizes = [16, 32], strides = [1, 1]} : vector<16x64xf32> to vector<16x32xf32>
      %32 = vector.shape_cast %31 : vector<16x32xf32> to vector<2x8x32xf32>
      %33 = vector.broadcast %0 : f32 to vector<2x32xf32>
      %34 = arith.mulf %23, %33 : vector<2x32xf32>
      %35 = vector.shape_cast %34 : vector<2x32xf32> to vector<2x1x32xf32>
      %36 = vector.broadcast %35 : vector<2x1x32xf32> to vector<2x8x32xf32>
      %37 = arith.mulf %36, %30 : vector<2x8x32xf32>
      %38 = vector.shape_cast %37 : vector<2x8x32xf32> to vector<16x32xf32>
      %39 = arith.truncf %38 : vector<16x32xf32> to vector<16x32xbf16>
      %c0_28 = arith.constant 0 : index
      %c0_29 = arith.constant 0 : index
      %40 = vector.load %arg10[%c0_28, %c0_29] : memref<32x4xbf16, #tpu.memory_space<vmem>>, vector<32x4xbf16>
      %cst_30 = arith.constant dense<0.000000e+00> : vector<16x4xf32>
      %41 = tpu.matmul %39, %40, %cst_30 {dimension_numbers = #tpu.dot_dimension_numbers<[1], [0], [0], [1], [0, 0, 1, 1], [], []>} : vector<16x32xbf16>, vector<32x4xbf16>, vector<16x4xf32> -> vector<16x4xf32>
      %42 = vector.shape_cast %41 : vector<16x4xf32> to vector<2x8x4xf32>
      %cst_31 = arith.constant dense<0xFF800000> : vector<2x4xf32>
      %43 = vector.multi_reduction <maximumf>, %42, %cst_31 [1] : vector<2x8x4xf32> to vector<2x4xf32>
      %44 = vector.shape_cast %43 : vector<2x4xf32> to vector<2x1x4xf32>
      %45 = vector.broadcast %44 : vector<2x1x4xf32> to vector<2x8x4xf32>
      %46 = arith.subf %42, %45 : vector<2x8x4xf32>
      %47 = math.exp %46 : vector<2x8x4xf32>
      %cst_32 = arith.constant dense<0.000000e+00> : vector<2x4xf32>
      %48 = vector.multi_reduction <add>, %47, %cst_32 [1] : vector<2x8x4xf32> to vector<2x4xf32>
      %49 = vector.shape_cast %48 : vector<2x4xf32> to vector<2x1x4xf32>
      %50 = tpu.reciprocal %49 {approx = true} : vector<2x1x4xf32> -> vector<2x1x4xf32>
      %51 = vector.broadcast %50 : vector<2x1x4xf32> to vector<2x8x4xf32>
      %52 = arith.mulf %47, %51 : vector<2x8x4xf32>
      %53 = vector.shape_cast %52 : vector<2x8x4xf32> to vector<16x4xf32>
      %54 = arith.truncf %53 : vector<16x4xf32> to vector<16x4xbf16>
      %c0_33 = arith.constant 0 : index
      %c0_34 = arith.constant 0 : index
      %55 = vector.load %arg11[%c0_33, %c0_34] : memref<4x32xbf16, #tpu.memory_space<vmem>>, vector<4x32xbf16>
      %cst_35 = arith.constant dense<0.000000e+00> : vector<16x32xf32>
      %56 = tpu.matmul %54, %55, %cst_35 {dimension_numbers = #tpu.dot_dimension_numbers<[1], [0], [0], [1], [0, 0, 1, 1], [], []>} : vector<16x4xbf16>, vector<4x32xbf16>, vector<16x32xf32> -> vector<16x32xf32>
      %57 = vector.shape_cast %56 : vector<16x32xf32> to vector<2x8x32xf32>
      %58 = arith.mulf %57, %32 : vector<2x8x32xf32>
      %cst_36 = arith.constant dense<0.000000e+00> : vector<2x32xf32>
      %59 = vector.multi_reduction <add>, %58, %cst_36 [1] : vector<2x8x32xf32> to vector<2x32xf32>
      %60 = arith.truncf %59 : vector<2x32xf32> to vector<2x32xbf16>
      %c0_37 = arith.constant 0 : index
      %c0_38 = arith.constant 0 : index
      %61 = vector.load %arg7[%c0_37, %c0_38] : memref<32x32xbf16, #tpu.memory_space<vmem>>, vector<32x32xbf16>
      %cst_39 = arith.constant dense<0.000000e+00> : vector<2x32xf32>
      %62 = tpu.matmul %60, %61, %cst_39 {dimension_numbers = #tpu.dot_dimension_numbers<[1], [0], [0], [1], [0, 0, 1, 1], [], []>} : vector<2x32xbf16>, vector<32x32xbf16>, vector<2x32xf32> -> vector<2x32xf32>
      %63 = vector.broadcast %18 : vector<1x32xf32> to vector<2x32xf32>
      %64 = arith.addf %62, %63 : vector<2x32xf32>
      %65 = arith.truncf %64 : vector<2x32xf32> to vector<2x32xbf16>
      %66 = arith.truncf %14 : vector<2x32xf32> to vector<2x32xbf16>
      %67 = tpu.concatenate %11, %65, %66 in 1 : vector<2x32xbf16>, vector<2x32xbf16>, vector<2x32xbf16> -> vector<2x96xbf16>
      %c0_40 = arith.constant 0 : index
      %c0_41 = arith.constant 0 : index
      %68 = vector.load %arg8[%c0_40, %c0_41] : memref<96x128xbf16, #tpu.memory_space<vmem>>, vector<96x128xbf16>
      %cst_42 = arith.constant dense<0.000000e+00> : vector<2x128xf32>
      %69 = tpu.matmul %67, %68, %cst_42 {dimension_numbers = #tpu.dot_dimension_numbers<[1], [0], [0], [1], [0, 0, 1, 1], [], []>} : vector<2x96xbf16>, vector<96x128xbf16>, vector<2x128xf32> -> vector<2x128xf32>
      %70 = vector.broadcast %19 : vector<1x128xf32> to vector<2x128xf32>
      %71 = arith.addf %69, %70 : vector<2x128xf32>
      %72 = vector.extract_strided_slice %71 {offsets = [0, 0], sizes = [2, 32], strides = [1, 1]} : vector<2x128xf32> to vector<2x32xf32>
      %73 = arith.negf %72 : vector<2x32xf32>
      %74 = math.exp %73 : vector<2x32xf32>
      %cst_43 = arith.constant 1.000000e+00 : f32
      %75 = vector.broadcast %cst_43 : f32 to vector<2x32xf32>
      %76 = arith.addf %75, %74 : vector<2x32xf32>
      %77 = arith.divf %75, %76 : vector<2x32xf32>
      %78 = vector.extract_strided_slice %71 {offsets = [0, 32], sizes = [2, 32], strides = [1, 1]} : vector<2x128xf32> to vector<2x32xf32>
      %79 = arith.negf %78 : vector<2x32xf32>
      %80 = math.exp %79 : vector<2x32xf32>
      %cst_44 = arith.constant 1.000000e+00 : f32
      %81 = vector.broadcast %cst_44 : f32 to vector<2x32xf32>
      %82 = arith.addf %81, %80 : vector<2x32xf32>
      %83 = arith.divf %81, %82 : vector<2x32xf32>
      %84 = vector.extract_strided_slice %71 {offsets = [0, 64], sizes = [2, 32], strides = [1, 1]} : vector<2x128xf32> to vector<2x32xf32>
      %85 = math.tanh %84 : vector<2x32xf32>
      %86 = vector.extract_strided_slice %71 {offsets = [0, 96], sizes = [2, 32], strides = [1, 1]} : vector<2x128xf32> to vector<2x32xf32>
      %87 = arith.negf %86 : vector<2x32xf32>
      %88 = math.exp %87 : vector<2x32xf32>
      %cst_45 = arith.constant 1.000000e+00 : f32
      %89 = vector.broadcast %cst_45 : f32 to vector<2x32xf32>
      %90 = arith.addf %89, %88 : vector<2x32xf32>
      %91 = arith.divf %89, %90 : vector<2x32xf32>
      %92 = arith.mulf %83, %15 : vector<2x32xf32>
      %93 = arith.mulf %77, %85 : vector<2x32xf32>
      %94 = arith.addf %92, %93 : vector<2x32xf32>
      %95 = math.tanh %94 : vector<2x32xf32>
      %96 = arith.mulf %91, %95 : vector<2x32xf32>
      %97 = arith.truncf %96 : vector<2x32xf32> to vector<2x32xbf16>
      %c0_46 = arith.constant 0 : index
      %c0_47 = arith.constant 0 : index
      %98 = vector.load %arg16[%c0_46, %c0_47] : memref<2x32xbf16, #tpu.memory_space<vmem>>, vector<2x32xbf16>
      tpu.vector_store %arg16[%c0_46, %c0_47], %97 {strides = array<i32>} : memref<2x32xbf16, #tpu.memory_space<vmem>>, vector<2x32xbf16>,
      %cst_48 = arith.constant 0.000000e+00 : f32
      %99 = vector.broadcast %cst_48 : f32 to vector<2x64xf32>
      %100 = tpu.concatenate %96, %94, %99 in 1 : vector<2x32xf32>, vector<2x32xf32>, vector<2x64xf32> -> vector<2x128xf32>
      %c0_49 = arith.constant 0 : index
      %c0_50 = arith.constant 0 : index
      %101 = vector.load %arg15[%c0_49, %c0_50] : memref<2x128xf32, #tpu.memory_space<vmem>>, vector<2x128xf32>
      tpu.vector_store %arg15[%c0_49, %c0_50], %100 {strides = array<i32>} : memref<2x128xf32, #tpu.memory_space<vmem>>, vector<2x128xf32>,
    } else {
    }
    %c0 = arith.constant 0 : index
    %c0_2 = arith.constant 0 : index
    %4 = vector.load %arg16[%c0, %c0_2] : memref<2x32xbf16, #tpu.memory_space<vmem>>, vector<2x32xbf16>
    %c0_3 = arith.constant 0 : index
    %c0_4 = arith.constant 0 : index
    %5 = vector.load %arg9[%c0_3, %c0_4] : memref<32x128xbf16, #tpu.memory_space<vmem>>, vector<32x128xbf16>
    %cst_5 = arith.constant dense<0.000000e+00> : vector<2x128xf32>
    %6 = tpu.matmul %4, %5, %cst_5 {dimension_numbers = #tpu.dot_dimension_numbers<[1], [0], [0], [1], [0, 0, 1, 1], [], []>} : vector<2x32xbf16>, vector<32x128xbf16>, vector<2x128xf32> -> vector<2x128xf32>
    %c0_6 = arith.constant 0 : index
    %c0_7 = arith.constant 0 : index
    %7 = vector.load %arg13[%c0_6, %c0_7] : memref<1x128xf32, #tpu.memory_space<vmem>>, vector<1x128xf32>
    %8 = vector.broadcast %7 : vector<1x128xf32> to vector<2x128xf32>
    %9 = arith.addf %6, %8 : vector<2x128xf32>
    %c0_8 = arith.constant 0 : index
    %c0_9 = arith.constant 0 : index
    %10 = vector.load %arg14[%c0_8, %c0_9] : memref<2x128xf32, #tpu.memory_space<vmem>>, vector<2x128xf32>
    tpu.vector_store %arg14[%c0_8, %c0_9], %9 {strides = array<i32>} : memref<2x128xf32, #tpu.memory_space<vmem>>, vector<2x128xf32>,
    return
  }
  func.func @transform_0(%arg0: i32, %arg1: i32) -> (i32, i32) {
    %c0_i32 = arith.constant 0 : i32
    %c0_i32_0 = arith.constant 0 : i32
    return %arg0, %c0_i32 : i32, i32
  }
  func.func @transform_1(%arg0: i32, %arg1: i32) -> (i32, i32, i32) {
    %c0_i32 = arith.constant 0 : i32
    %c0_i32_0 = arith.constant 0 : i32
    %c0_i32_1 = arith.constant 0 : i32
    return %arg0, %c0_i32, %c0_i32_0 : i32, i32, i32
  }
  func.func @transform_2(%arg0: i32, %arg1: i32) -> (i32, i32) {
    %c0_i32 = arith.constant 0 : i32
    %c0_i32_0 = arith.constant 0 : i32
    return %arg0, %c0_i32 : i32, i32
  }
  func.func @transform_3(%arg0: i32, %arg1: i32) -> (i32, i32) {
    %c0_i32 = arith.constant 0 : i32
    %c0_i32_0 = arith.constant 0 : i32
    %c0_i32_1 = arith.constant 0 : i32
    return %c0_i32, %c0_i32_0 : i32, i32
  }
  func.func @transform_4(%arg0: i32, %arg1: i32) -> (i32, i32) {
    %c0_i32 = arith.constant 0 : i32
    %c0_i32_0 = arith.constant 0 : i32
    %c0_i32_1 = arith.constant 0 : i32
    return %c0_i32, %c0_i32_0 : i32, i32
  }
  func.func @transform_5(%arg0: i32, %arg1: i32) -> (i32, i32) {
    %c0_i32 = arith.constant 0 : i32
    %c0_i32_0 = arith.constant 0 : i32
    %c0_i32_1 = arith.constant 0 : i32
    return %c0_i32, %c0_i32_0 : i32, i32
  }
  func.func @transform_6(%arg0: i32, %arg1: i32) -> (i32, i32) {
    %c0_i32 = arith.constant 0 : i32
    %c0_i32_0 = arith.constant 0 : i32
    %c0_i32_1 = arith.constant 0 : i32
    return %c0_i32, %c0_i32_0 : i32, i32
  }
  func.func @transform_7(%arg0: i32, %arg1: i32) -> (i32, i32) {
    %c0_i32 = arith.constant 0 : i32
    %c0_i32_0 = arith.constant 0 : i32
    return %c0_i32, %arg1 : i32, i32
  }
  func.func @transform_8(%arg0: i32, %arg1: i32) -> (i32, i32) {
    %c0_i32 = arith.constant 0 : i32
    %c0_i32_0 = arith.constant 0 : i32
    %c0_i32_1 = arith.constant 0 : i32
    return %c0_i32, %c0_i32_0 : i32, i32
  }
  func.func @transform_9(%arg0: i32, %arg1: i32) -> (i32, i32) {
    %c0_i32 = arith.constant 0 : i32
    %c0_i32_0 = arith.constant 0 : i32
    %c0_i32_1 = arith.constant 0 : i32
    return %c0_i32, %c0_i32_0 : i32, i32
  }
  func.func @transform_10(%arg0: i32, %arg1: i32) -> (i32, i32) {
    %c0_i32 = arith.constant 0 : i32
    %c0_i32_0 = arith.constant 0 : i32
    %c0_i32_1 = arith.constant 0 : i32
    return %c0_i32, %c0_i32_0 : i32, i32
  }
  func.func @transform_11(%arg0: i32, %arg1: i32) -> (i32, i32) {
    %c0_i32 = arith.constant 0 : i32
    %c0_i32_0 = arith.constant 0 : i32
    return %c0_i32, %arg1 : i32, i32
  }
  func.func @transform_12(%arg0: i32, %arg1: i32) -> (i32, i32) {
    %c0_i32 = arith.constant 0 : i32
    return %arg0, %arg1 : i32, i32
  }
  func.func @transform_13(%arg0: i32, %arg1: i32) -> (i32, i32) {
    %c0_i32 = arith.constant 0 : i32
    %c0_i32_0 = arith.constant 0 : i32
    return %arg0, %c0_i32 : i32, i32
  }
}

</mosaic_0001>

<bundles_post_ra>
// kernel: decoder_forward.1
= control target key start
LH: loop header
LB: loop body
LE: loop exit
PB: predicated region body
PF: predicated region fallthrough
CT: control target
= control target key end

     0   :  { %19 = vsyncpa [#allocation4], 0  ;;  %s1179_s0 = inlined_call_operand.vmem [shape: bf16[2,32], index: 0, kind: input, shape index: {}]   ;;  %s1180_s1 = inlined_call_operand.vmem [shape: bf16[2,8,32], index: 1, kind: input, shape index: {}]   ;;  %s1181_s2 = inlined_call_operand.vmem [shape: f32[2,64], index: 2, kind: input, shape index: {}]   ;;  %s1182_s3 = inlined_call_operand.vmem [shape: bf16[32,32], index: 3, kind: input, shape index: {}]   ;;  %s1183_s4 = inlined_call_operand.vmem [shape: bf16[32,64], index: 4, kind: input, shape index: {}]   ;;  %s1184_s5 = inlined_call_operand.vmem [shape: bf16[32,32], index: 5, kind: input, shape index: {}]   ;;  %s1185_s6 = inlined_call_operand.vmem [shape: bf16[96,128], index: 6, kind: input, shape index: {}]   ;;  %s1186_s7 = inlined_call_operand.vmem [shape: bf16[32,128], index: 7, kind: input, shape index: {}]   ;;  %s1187_s8 = inlined_call_operand.vmem [shape: bf16[32,4], index: 8, kind: input, shape index: {}]   ;;  %s1188_s9 = inlined_call_operand.vmem [shape: bf16[4,32], index: 9, kind: input, shape index: {}]   ;;  %s1189_s10 = inlined_call_operand.vmem [shape: f32[8,128], index: 10, kind: input, shape index: {}]   ;;  %s1190_s11 = inlined_call_operand.hbm [shape: f32[1,128], index: 11, kind: input, shape index: {}]   ;;  %s1191_s12 = inlined_call_operand.hbm [shape: f32[2,128], index: 12, kind: output, shape index: {0}]   ;;  %s1192_s13 = inlined_call_operand.vmem [shape: f32[2,128], index: 13, kind: output, shape index: {1}]  }
   0x1   :  { %20 = vsyncpa [#allocation5], 0  ;;  %s937_s25 = smov [#allocation3]   ;;  %s889_s29 = scalar_lea.hbm %s1190_s11, 16 }
   0x2   :  { %s49_s26 = sshll.u32 %s937_s25, 4  ;;  %p890_p0 = scmp.ne.s32.totalorder %s1190_s11, %s889_s29  ;;  %s50_s26 = int_to_ptr.vmem [resolvable:$true] %s49_s26 }
   0x3   :  { %p893_p1 = scmp.lt.u32.totalorder %s889_s29, %s1190_s11 }
   0x5   :  { %p895_p2 = pnand %p893_p1, %p890_p0 }
   0x7   :  { %898 = shalt.err (!%p895_p2)
}
   0x8   :  { %s899_s17 = scalar_lea.vmem %s50_s26, 16  ;;  %s903_s18 = scalar_lea.vmem %s50_s26, 32 }
   0x9   :  { %p900_p3 = scmp.ne.s32.totalorder %s50_s26, %s899_s17  ;;  %p904_p4 = scmp.lt.s32.totalorder %s50_s26, %s50_s26 }
   0xa   :  { %p905_p5 = scmp.lt.s32.totalorder %s903_s18, %s899_s17 }
   0xc   :  { %p906_p6 = por %p905_p5, %p904_p4 }
   0xe   :  { %p907_p7 = pnand %p906_p6, %p900_p3 }
  0x10   :  { %910 = shalt.err (!%p907_p7)
}
  0x11   :  { %52 = dma.hbm_to_vmem [thread:$0]  %s1190_s11, 16, %s50_s26, [#allocation4]  }
  0x12   :  { %933 = dma.done.wait [#allocation4], 16  }
  0x13   :  { %934 = vsyncadd [#allocation4], 4294967280  ;;  %v938_v0 = vmov 0.0   ;;  %vm939_vm0 = vmmov 0   ;;  %v856_v1 = vld [vmem:[%s1182_s3] sm:$0xff]   ;;  %v857_v2 = vld [vmem:[%s1182_s3 + $0x8] sm:$0xff]   ;;  %v207_v11 = vlaneseq }
  0x14   :  { %786 = vmatprep.subr.bf16.mxu0 %v938_v0  ;;  %794 = vmatprep.subr.bf16.mxu1 %v938_v0  ;;  %v858_v3 = vld [vmem:[%s1183_s4] sm:$0xff]   ;;  %v859_v4 = vld [vmem:[%s1183_s4 + $0x8] sm:$0xff]   ;;  %vm89_vm1 = vcmask 261120   ;;  %v940_v9 = vmov 1966171168   ;;  %vm343_vm2 = vcmask 1041408  }
  0x15   :  { %790 = vmatprep.mubr.msk.bf16.mxu0 %vm939_vm0, %v938_v0  ;;  %798 = vmatprep.mubr.msk.bf16.mxu1 %vm939_vm0, %v938_v0  ;;  %v1049_v5 = vld [vmem:[%s1179_s0] sm:$0x1]  ;;  %v862_v8 = vld [vmem:[%s1187_s8 + $0x8] sm:$0xff]   ;;  %v205_v10 = vunpack.c.l.s4 %v940_v9  ;;  %v208_v13 = vshrl.u32 %v207_v11, 7  ;;  %v736_v16 = vld [vmem:[%s1189_s10 + $0x1] ss:$0 sm:$0xff] }
  0x16   :  { %787 = vmatpush3.bf16.msra.mxu0 %v856_v1  ;;  %795 = vmatpush3.bf16.msra.mxu1 %v858_v3  ;;  %v860_v6 = vld [vmem:[%s1180_s1] sm:$0xff]   ;;  %vm299_vm3 = vcmask 31744   ;;  %vm426_vm4 = vcmask 1041409   ;;  %s942_s17 = smov 32   ;;  %vm494_vm5 = vcmask 523264   ;;  %vm549_vm6 = vcmask 785408  }
  0x17   :  { %788 = vmatprep.subr.bf16.mxu0 %v938_v0  ;;  %796 = vmatprep.subr.bf16.mxu1 %v938_v0  ;;  %v861_v7 = vld [vmem:[%s1187_s8] sm:$0xff]   ;;  %v206_v12 = vunpack.c.0.s8 %v205_v10  ;;  %v228_v28 = vsub.s32 0, %v208_v13  ;;  %s941_s8 = smov 96   ;;  %vm635_vm7 = vcmask 253952   ;;  %s944_s21 = smov [#allocation6]  }
  0x18   :  { %v732_v14 = vld [vmem:[%s1189_s10] ss:$0 sm:$0xff]  ;;  %s719_s22 = sshll.u32 %s944_s21, 4  ;;  %s720_s22 = int_to_ptr.vmem [resolvable:$true] %s719_s22 }
  0x19   :  { %v1078_v18 = vsub.s32 %v206_v12, %v208_v13  ;;  %v339_v39 = vld [vmem:[%s1188_s9] sm:$0x3]  ;;  %s911_s23 = scalar_lea.vmem %s720_s22, 32  ;;  %p916_p9 = scmp.lt.s32.totalorder %s720_s22, %s720_s22 }
  0x1a   :  { %789 = vmatpush3.bf16.msra.mxu0 %v857_v2  ;;  %797 = vmatpush3.bf16.msra.mxu1 %v859_v4  ;;  %v345_v40 = vsel %vm343_vm2, %v339_v39, 0  ;;  %p912_p8 = scmp.ne.s32.totalorder %s720_s22, %s911_s23  ;;  %p917_p10 = scmp.lt.s32.totalorder %s911_s23, %s911_s23 }
  0x1b   :  { %802 = vmatprep.subr.bf16.mxu0 %v938_v0  ;;  %810 = vmatprep.subr.bf16.mxu1 %v938_v0 }
  0x1c   :  { %p918_p11 = por %p917_p10, %p916_p9 }
  0x1d   :  { %791 = vmatmul.mubr.msk.bf16.vlgmr.msra.gmra.mrb[0].mxu0 %vm89_vm1, %v1049_v5  ;;  %799 = vmatmul.mubr.msk.bf16.vlgmr.msra.gmra.mrb[0].mxu1 %vm89_vm1, %v860_v6 }
  0x1e   :  { %806 = vmatprep.mubr.msk.bf16.mxu0 %vm939_vm0, %v938_v0  ;;  %812 = vmatprep.mubr.msk.bf16.mxu1 %vm939_vm0, %v938_v0  ;;  %p919_p12 = pnand %p918_p11, %p912_p8 }
  0x1f   :  { %803 = vmatpush3.bf16.msra.mxu0 %v861_v7  ;;  %811 = vmatpush3.bf16.msra.mxu1 %v345_v40 }
  0x20   :  { %804 = vmatprep.subr.bf16.mxu0 %v938_v0  ;;  %824 = vmatprep.subr.bf16.mxu1 %v938_v0 }
  0x23   :  { %805 = vmatpush3.bf16.msra.mxu0 %v862_v8 }
  0x24   :  { %816 = vmatprep.subr.bf16.mxu0 %v938_v0 }
  0xf0   :  { %v127_v15 = vpop.f32.mrb[0].mxu0  ;;  %v195_v21 = vpop.f32.mrb[0].mxu1 }
  0xf1   :  { %v128_v17 = vadd.f32 %v732_v14, %v127_v15  ;;  %v792_v19 = vpop.f32.mrb[1].mxu0  ;;  %v196_v24 = vadd.f32 %v736_v16, %v195_v21  ;;  %v800_v25 = vpop.f32.mrb[1].mxu1 }
  0xf2   :  { %v130_v20 = vpop.f32.mrb[2].mxu0  ;;  %v198_v26 = vpop.f32.mrb[2].mxu1 }
  0xf3   :  { %v202_v22 = vmul.f32 0.35355338, %v128_v17  ;;  %v793_v23 = vpop.f32.mrb[3].mxu0  ;;  %390 = vrot.lane.b32.xlu0 %v196_v24, %s941_s8  ;;  %v199_v29 = vadd.f32 %v736_v16, %v198_v26  ;;  %v801_v30 = vpop.f32.mrb[3].mxu1 }
  0xf4   :  { %v863_v23 = vld [vmem:[%s1184_s5] sm:$0xff]  }
  0xf5   :  { %v210_v27 = vrot.slane %v202_v22, %v1078_v18 }
  0xf7   :  { %v211_v31 = vcombine.high %v210_v27, %v210_v27  ;;  %v218_v32 = vrot.slane %v210_v27, %v1078_v18  ;;  %392 = vrot.lane.b32.xlu0 %v199_v29, %s941_s8 }
  0xf9   :  { %v229_v33 = vrot.slane %v218_v32, %v228_v28  ;;  %v225_v34 = vrot.slane %v211_v31, %v1078_v18 }
  0xfb   :  { %v236_v35 = vmul.f32 %v229_v33, %v196_v24  ;;  %v233_v36 = vrot.slane %v225_v34, %v228_v28  ;;  %v864_v24 = vld [vmem:[%s1184_s5 + $0x8] sm:$0xff]  }
  0xfd   :  { %v237_v37 = vmul.f32 %v233_v36, %v199_v29 }
  0xff   :  { %v238_v38 = vpack.c.bf16 %v237_v37, %v236_v35 }
 0x101   :  { %807 = vmatmul.mubr.msk.bf16.vlgmr.msra.gmra.mrb[4].mxu0 %vm89_vm1, %v238_v38 }
 0x102   :  { %820 = vmatprep.mubr.msk.bf16.mxu0 %vm939_vm0, %v938_v0  ;;  %817 = vmatpush3.bf16.msra.mxu0 %v863_v23 }
 0x103   :  { %818 = vmatprep.subr.bf16.mxu0 %v938_v0 }
 0x106   :  { %819 = vmatpush3.bf16.msra.mxu0 %v864_v24 }
 0x107   :  { %840 = vmatprep.subr.bf16.mxu0 %v938_v0 }
 0x165   :  { %v391_v25 = vpop.permute.xlu0 %390 }
 0x169   :  { %v393_v29 = vpop.permute.xlu0 %392 }
 0x1d4   :  { %v292_v41 = vpop.f32.mrb[4].mxu0 }
 0x1d5   :  { %v300_v42 = vsel %vm299_vm3, %v292_v41, -inf  ;;  %v808_v43 = vpop.f32.mrb[5].mxu0 }
 0x1d6   :  { %v301_v44 = vrot.slane %v300_v42, 4  ;;  %v295_v45 = vpop.f32.mrb[6].mxu0 }
 0x1d7   :  { %v307_v46 = vsel %vm299_vm3, %v295_v45, -inf  ;;  %v809_v47 = vpop.f32.mrb[7].mxu0 }
 0x1d8   :  { %v302_v48 = vmax.f32 %v300_v42, %v301_v44  ;;  %v308_v49 = vrot.slane %v307_v46, 4 }
 0x1da   :  { %v303_v50 = vrot.slane %v302_v48, 2  ;;  %v309_v51 = vmax.f32 %v307_v46, %v308_v49 }
 0x1dc   :  { %v304_v52 = vmax.f32 %v302_v48, %v303_v50  ;;  %v310_v53 = vrot.slane %v309_v51, 2 }
 0x1de   :  { %v305_v54 = vrot.slane %v304_v52, 1  ;;  %v311_v55 = vmax.f32 %v309_v51, %v310_v53  ;;  %v865_v53 = vld [vmem:[%s1185_s6] sm:$0xff]  }
 0x1e0   :  { %v306_v56 = vmax.f32 %v304_v52, %v305_v54  ;;  %v312_v57 = vrot.slane %v311_v55, 1  ;;  %v866_v54 = vld [vmem:[%s1185_s6 + $0x8] sm:$0xff]  }
 0x1e2   :  { %v314_v58 = vsub.f32 %v292_v41, %v306_v56  ;;  %v313_v59 = vmax.f32 %v311_v55, %v312_v57  ;;  %v867_v55 = vld [vmem:[%s1185_s6 + $0x10] sm:$0xff]   ;;  %v868_v56 = vld [vmem:[%s1185_s6 + $0x18] sm:$0xff]   ;;  %v869_v57 = vld [vmem:[%s1185_s6 + $0x20] sm:$0xff]  }
 0x1e4   :  { %v316_v60 = vmul.f32 1.442695, %v314_v58  ;;  %v315_v61 = vsub.f32 %v295_v45, %v313_v59  ;;  %v870_v58 = vld [vmem:[%s1185_s6 + $0x28] sm:$0xff]   ;;  %v745_v59 = vld [vmem:[%s1189_s10 + $0x2] ss:$0 sm:$0xff]  ;;  %s943_s6 = smov 64  }
 0x1e6   :  { %873 = vpow2.f32 %v316_v60  ;;  %v318_v62 = vmul.f32 1.442695, %v315_v61 }
 0x1e8   :  { %875 = vpow2.f32 %v318_v62 }
 0x1f0   :  { %v874_v63 = vpop.eup %873 }
 0x1f1   :  { %v320_v1 = vsel %vm299_vm3, %v874_v63, 0.0 }
 0x1f2   :  { %v876_v2 = vpop.eup %875  ;;  %v321_v3 = vrot.slane %v320_v1, 4 }
 0x1f3   :  { %v327_v4 = vsel %vm299_vm3, %v876_v2, 0.0 }
 0x1f4   :  { %v322_v6 = vadd.f32 %v321_v3, %v320_v1  ;;  %v328_v7 = vrot.slane %v327_v4, 4  ;;  %v64_v1 = vld [vmem:[%s1181_s2] sm:$0x3] }
 0x1f6   :  { %v323_v8 = vrot.slane %v322_v6, 2  ;;  %v329_v9 = vadd.f32 %v328_v7, %v327_v4  ;;  %v485_v4 = vpack.c.bf16 %v64_v1, %v64_v1 }
 0x1f8   :  { %v324_v10 = vadd.f32 %v323_v8, %v322_v6  ;;  %v330_v11 = vrot.slane %v329_v9, 2 }
 0x1fa   :  { %v325_v12 = vrot.slane %v324_v10, 1  ;;  %v331_v13 = vadd.f32 %v330_v11, %v329_v9 }
 0x1fc   :  { %v326_v14 = vadd.f32 %v325_v12, %v324_v10  ;;  %v332_v15 = vrot.slane %v331_v13, 1  ;;  %v749_v10 = vld [vmem:[%s1189_s10 + $0x3] ss:$0 sm:$0xff] }
 0x1fe   :  { %877 = vrcp.f32 %v326_v14  ;;  %v333_v16 = vadd.f32 %v332_v15, %v331_v13 }
 0x200   :  { %879 = vrcp.f32 %v333_v16 }
 0x208   :  { %v878_v17 = vpop.eup %877 }
 0x209   :  { %v336_v20 = vmul.f32 %v878_v17, %v874_v63 }
 0x20a   :  { %v880_v19 = vpop.eup %879 }
 0x20b   :  { %v337_v21 = vmul.f32 %v880_v19, %v876_v2 }
 0x20d   :  { %v338_v22 = vpack.c.bf16 %v337_v21, %v336_v20 }
 0x20f   :  { %813 = vmatmul.mubr.msk.bf16.vlgmr.msra.gmra.mrb[4].mxu1 %vm299_vm3, %v338_v22 }
 0x210   :  { %836 = vmatprep.mubr.msk.bf16.mxu1 %vm939_vm0, %v938_v0  ;;  %825 = vmatpush3.bf16.msra.mxu1 %v865_v53 }
 0x211   :  { %826 = vmatprep.subr.bf16.mxu1 %v938_v0 }
 0x214   :  { %827 = vmatpush3.bf16.msra.mxu1 %v866_v54 }
 0x215   :  { %828 = vmatprep.subr.bf16.mxu1 %v938_v0 }
 0x218   :  { %829 = vmatpush3.bf16.msra.mxu1 %v867_v55 }
 0x219   :  { %830 = vmatprep.subr.bf16.mxu1 %v938_v0 }
 0x21c   :  { %831 = vmatpush3.bf16.msra.mxu1 %v868_v56 }
 0x21d   :  { %832 = vmatprep.subr.bf16.mxu1 %v938_v0 }
 0x220   :  { %833 = vmatpush3.bf16.msra.mxu1 %v869_v57 }
 0x221   :  { %834 = vmatprep.subr.bf16.mxu1 %v938_v0 }
 0x224   :  { %835 = vmatpush3.bf16.msra.mxu1 %v870_v58 }
 0x2e2   :  { %v381_v26 = vpop.f32.mrb[4].mxu1 }
 0x2e3   :  { %v396_v27 = vmul.f32 %v391_v25, %v381_v26  ;;  %v814_v28 = vpop.f32.mrb[5].mxu1 }
 0x2e4   :  { %v384_v30 = vpop.f32.mrb[6].mxu1  ;;  %v872_v28 = vld [vmem:[%s1186_s7 + $0x8] sm:$0xff]  }
 0x2e5   :  { %v398_v31 = vsel %vm89_vm1, %v396_v27, 0.0  ;;  %v397_v32 = vmul.f32 %v393_v29, %v384_v30  ;;  %v815_v33 = vpop.f32.mrb[7].mxu1  ;;  %v871_v27 = vld [vmem:[%s1186_s7] sm:$0xff]  }
 0x2e6   :  { %v399_v34 = vrot.slane %v398_v31, 4 }
 0x2e7   :  { %v405_v35 = vsel %vm89_vm1, %v397_v32, 0.0 }
 0x2e8   :  { %v400_v36 = vadd.f32 %v399_v34, %v398_v31  ;;  %v406_v37 = vrot.slane %v405_v35, 4 }
 0x2ea   :  { %v401_v38 = vrot.slane %v400_v36, 2  ;;  %v407_v39 = vadd.f32 %v406_v37, %v405_v35 }
 0x2ec   :  { %v402_v40 = vadd.f32 %v401_v38, %v400_v36  ;;  %v408_v41 = vrot.slane %v407_v39, 2  ;;  %v758_v38 = vld [vmem:[#allocation3] ss:$0 sm:$0xff] }
 0x2ee   :  { %v403_v42 = vrot.slane %v402_v40, 1  ;;  %v409_v43 = vadd.f32 %v408_v41, %v407_v39 }
 0x2f0   :  { %v404_v44 = vadd.f32 %v403_v42, %v402_v40  ;;  %v410_v45 = vrot.slane %v409_v43, 1 }
 0x2f2   :  { %v412_v46 = vpack.c.bf16 %v404_v44, %v404_v44  ;;  %v411_v47 = vadd.f32 %v410_v45, %v409_v43 }
 0x2f4   :  { %v413_v48 = vpack.c.bf16 %v411_v47, %v411_v47  ;;  %v424_v49 = vunpack.c.l.b16 %v412_v46 }
 0x2f6   :  { %v425_v50 = vunpack.c.l.b16 %v413_v48 }
 0x2f8   :  { %v427_v51 = vsel %vm426_vm4, %v425_v50, %v424_v49 }
 0x2f9   :  { %v428_v52 = vpack.c.b16 %v427_v51, %v427_v51 }
 0x2fb   :  { %821 = vmatmul.mubr.msk.bf16.vlgmr.msra.gmra.mrb[8].mxu0 %vm89_vm1, %v428_v52 }
 0x2fc   :  { %844 = vmatprep.mubr.msk.bf16.mxu0 %vm939_vm0, %v938_v0  ;;  %841 = vmatpush3.bf16.msra.mxu0 %v871_v27 }
 0x2fd   :  { %842 = vmatprep.subr.bf16.mxu0 %v938_v0 }
 0x300   :  { %843 = vmatpush3.bf16.msra.mxu0 %v872_v28 }
 0x3ce   :  { %v478_v60 = vpop.f32.mrb[8].mxu0 }
 0x3cf   :  { %v479_v61 = vadd.f32 %v745_v59, %v478_v60  ;;  %v822_v62 = vpop.f32.mrb[9].mxu0 }
 0x3d0   :  { %v481_v63 = vpop.f32.mrb[10].mxu0 }
 0x3d1   :  { %v484_v2 = vpack.c.bf16 %v479_v61, %v479_v61  ;;  %v823_v3 = vpop.f32.mrb[11].mxu0 }
 0x3d3   :  { %487 = vrot.lane.b32.xlu1 %v484_v2, %s942_s17 }
 0x3d7   :  { %490 = vrot.lane.b32.xlu1 %v485_v4, %s943_s6 }
 0x445   :  { %v488_v6 = vpop.permute.xlu1 %487 }
 0x446   :  { %v493_v7 = vsel %vm89_vm1, %v1049_v5, %v488_v6 }
 0x449   :  { %v491_v8 = vpop.permute.xlu1 %490 }
 0x44a   :  { %v496_v9 = vsel %vm494_vm5, %v493_v7, %v491_v8 }
 0x44b   :  { %837 = vmatmul.mubr.msk.bf16.vlgmr.msra.gmra.mrb[8].mxu1 %vm549_vm6, %v496_v9 }
 0x51e   :  { %v586_v11 = vpop.f32.mrb[8].mxu1 }
 0x51f   :  { %v587_v12 = vadd.f32 %v749_v10, %v586_v11  ;;  %v838_v13 = vpop.f32.mrb[9].mxu1 }
 0x520   :  { %v589_v14 = vpop.f32.mrb[10].mxu1 }
 0x521   :  { %881 = vtanh.f32 %v587_v12  ;;  %v839_v15 = vpop.f32.mrb[11].mxu1  ;;  %v757_v17 = vmul.f32 -1.442695, %v587_v12 }
 0x523   :  { %883 = vpow2.f32 %v757_v17 }
 0x52b   :  { %v882_v16 = vpop.eup %881 }
 0x52c   :  { %601 = vrot.lane.b32.xlu0 %v882_v16, %s943_s6 }
 0x52d   :  { %v884_v5 = vpop.eup %883 }
 0x52e   :  { %v595_v19 = vadd.f32 1.0, %v884_v5 }
 0x530   :  { %885 = vrcp.f32 %v595_v19 }
 0x53a   :  { %v886_v20 = vpop.eup %885 }
 0x53b   :  { %v599_v23 = vmul.f32 %v886_v20, %v64_v1 }
 0x59e   :  { %v602_v21 = vpop.permute.xlu0 %601 }
 0x59f   :  { %v604_v22 = vmul.f32 %v886_v20, %v602_v21 }
 0x5a1   :  { %606 = vrot.lane.b32.xlu1 %v604_v22, %s942_s17 }
 0x613   :  { %v607_v24 = vpop.permute.xlu1 %606 }
 0x614   :  { %v609_v25 = vadd.f32 %v607_v24, %v599_v23 }
 0x616   :  { %887 = vtanh.f32 %v609_v25 }
 0x620   :  { %v888_v26 = vpop.eup %887 }
 0x621   :  { %612 = vrot.lane.b32.xlu0 %v888_v26, %s943_s6 }
 0x693   :  { %v613_v29 = vpop.permute.xlu0 %612 }
 0x694   :  { %v615_v30 = vmul.f32 %v886_v20, %v613_v29 }
 0x696   :  { %v616_v31 = vpack.c.bf16 %v615_v30, %v615_v30  ;;  %638 = vrot.lane.b32.xlu0 %v615_v30, %s942_s17 }
 0x698   :  { %v624_v32 = vrot.slane %v616_v31, %v1078_v18 }
 0x69a   :  { %v631_v33 = vrot.slane %v624_v32, %v1078_v18 }
 0x69c   :  { %632 = vrot.lane.b32.xlu1 %v631_v33, %s942_s17 }
 0x708   :  { %v639_v34 = vpop.permute.xlu0 %638 }
 0x709   :  { %v641_v35 = vsel %vm89_vm1, %v639_v34, %v609_v25 }
 0x70a   :  { %v642_v36 = vsel %vm494_vm5, %v641_v35, 0.0 }
 0x70b   :  { %643 = vst [vmem:[%s1192_s13] sm:$0x3] %v642_v36 }
 0x70e   :  { %v633_v0 = vpop.permute.xlu1 %632 }
 0x70f   :  { %636 = vst.msk [vmem:[#allocation2] sm:$0x1] %vm635_vm7, %v633_v0 }
 0x716   :  { %v644_v37 = vld [vmem:[#allocation2] sm:$0x1] }
 0x717   :  { %845 = vmatmul.mubr.msk.bf16.vlgmr.msra.gmra.mrb[12].mxu0 %vm89_vm1, %v644_v37 }
 0x7ea   :  { %v706_v18 = vpop.f32.mrb[12].mxu0 }
 0x7eb   :  { %v707_v39 = vadd.f32 %v758_v38, %v706_v18  ;;  %v846_v40 = vpop.f32.mrb[13].mxu0 }
 0x7ec   :  { %v709_v41 = vpop.f32.mrb[14].mxu0 }
 0x7ed   :  { %712 = vst [vmem:[#allocation6] sm:$0x3] %v707_v39  ;;  %v847_v42 = vpop.f32.mrb[15].mxu0 }
 0x7ee   :  { %922 = shalt.err (!%p919_p12)
}
 0x7ef   :  { %s923_s11 = scalar_lea.hbm %s1191_s12, 32 }
 0x7f0   :  { %p924_p13 = scmp.ne.s32.totalorder %s1191_s12, %s923_s11  ;;  %p927_p0 = scmp.lt.u32.totalorder %s923_s11, %s1191_s12 }
 0x7f2   :  { %p929_p1 = pnand %p927_p0, %p924_p13 }
 0x7f4   :  { %932 = shalt.err (!%p929_p1)
}
 0x7f5   :  { %722 = dma.vmem_to_hbm [thread:$0]  %s720_s22, 32, %s1191_s12, [#allocation5]  }
 0x7f6   :  { %935 = dma.done.wait [#allocation5], 32  }
 0x7f7   :  { %936 = vsyncadd [#allocation5], 4294967264 }
 0x7f8   :  { %730 = vsyncpa [#allocation4], 1 }
 0x7f9   :  { %731 = vsyncpa [#allocation5], 1 }

</bundles_post_ra>
